<compile_context>
chip_gen: v7x
topology: tpu7x:2x2x1
jax: 0.10.0
libtpu: 0.0.40
codegen_flags: <defaults>
</compile_context>

<pallas_src>
import jax
import jax.numpy as jnp
from jax import lax
from jax.experimental import pallas as pl
from jax.experimental.pallas import tpu as pltpu


def _round_up(x, m):
    return (x + m - 1) // m * m


def _make_ffn_kernel(K, pad, T_p, Cin_p, F_p, Cout_p, mxu_dtype):
    """Kernel closure over static sizes (all channel dims lane-padded)."""

    def _build_cols(col_ref, src, C, Bb):
        # col[:, t, k*C:(k+1)*C] = src[:, t + k - pad, :]  (zero outside [0, T))
        for k in range(K):
            lo = max(0, pad - k)          # first valid destination row
            src_lo = max(0, k - pad)      # first source row
            n = T_p - abs(k - pad)        # number of valid rows
            if lo > 0:                    # zero top halo rows of this k-slab
                col_ref[:, :lo, k * C:(k + 1) * C] = jnp.zeros(
                    (Bb, lo, C), col_ref.dtype)
            if lo + n < T_p:              # zero bottom halo rows of this k-slab
                col_ref[:, lo + n:, k * C:(k + 1) * C] = jnp.zeros(
                    (Bb, T_p - lo - n, C), col_ref.dtype)
            col_ref[:, lo:lo + n, k * C:(k + 1) * C] = src[:, src_lo:src_lo + n, :]

    def kernel(x_ref, mask_ref, w1_ref, b1_ref, w2_ref, b2_ref, out_ref,
               col1_ref, col2_ref):
        Bb = x_ref.shape[0]
        mask = mask_ref[...].astype(jnp.float32)                  # (Bb, T, 1)

        # ---- conv_1(x * x_mask): im2col -> one MXU matmul, M = Bb*T ----
        xm = (x_ref[...].astype(jnp.float32) * mask).astype(mxu_dtype)
        _build_cols(col1_ref, xm, Cin_p, Bb)
        a1 = col1_ref[...].reshape(Bb * T_p, K * Cin_p)
        h = jnp.dot(a1, w1_ref[...], preferred_element_type=jnp.float32)
        h = jnp.maximum(h + b1_ref[...], 0.0)                     # bias + ReLU
        # TODO(synk): dropout implemented as identity (eval mode).

        # ---- conv_2(h * x_mask) ----
        hm = (h.reshape(Bb, T_p, F_p) * mask).astype(mxu_dtype)
        _build_cols(col2_ref, hm, F_p, Bb)
        a2 = col2_ref[...].reshape(Bb * T_p, K * F_p)
        y = jnp.dot(a2, w2_ref[...], preferred_element_type=jnp.float32)
        y = (y + b2_ref[...]).reshape(Bb, T_p, Cout_p) * mask     # final * x_mask
        out_ref[...] = y.astype(out_ref.dtype)

    return kernel


def ffn_pallas(x, x_mask, conv1_w, conv1_b, conv2_w, conv2_b, *, kernel_size,
               block_b=None, mxu_dtype=jnp.float32, vmem_limit_bytes=None):
    """Drop-in for FFN.forward.

    x:        (B, C_in, T)      (PyTorch NCT layout)
    x_mask:   (B, 1, T)
    conv*_w:  (C_out, C_in, K)  (PyTorch Conv1d weight layout)
    conv*_b:  (C_out,)
    returns:  (B, C_out, T)
    """
    B, Cin, T = x.shape
    F = conv1_w.shape[0]
    Cout = conv2_w.shape[0]
    K = kernel_size
    assert K % 2 == 1, "only odd kernel_size matches Conv1d(padding=K//2) lengths"
    pad = K // 2

    LANE, SUB = 128, 8
    Cin_p = _round_up(Cin, LANE)
    F_p = _round_up(F, LANE)
    Cout_p = _round_up(Cout, LANE)
    T_p = _round_up(T, SUB)

    # channels-last (B, T, C); zero-pad T (sublanes) and C (lanes).
    xt = jnp.transpose(x, (0, 2, 1)).astype(jnp.float32)
    xt = jnp.pad(xt, ((0, 0), (0, T_p - T), (0, Cin_p - Cin)))
    mt = jnp.transpose(x_mask, (0, 2, 1)).astype(jnp.float32)
    mt = jnp.pad(mt, ((0, 0), (0, T_p - T), (0, 0)))

    def prep_w(w, I_p, O_p):
        # (O, I, K) -> im2col weight (K*I_p, O_p), zero-padded lanes.
        O, I, Kk = w.shape
        w = jnp.transpose(w, (2, 1, 0))                         # (K, I, O)
        w = jnp.pad(w, ((0, 0), (0, I_p - I), (0, O_p - O)))
        return w.reshape(Kk * I_p, O_p).astype(mxu_dtype)

    w1p = prep_w(conv1_w, Cin_p, F_p)
    w2p = prep_w(conv2_w, F_p, Cout_p)
    b1p = jnp.pad(conv1_b, (0, F_p - F)).reshape(1, F_p).astype(jnp.float32)
    b2p = jnp.pad(conv2_b, (0, Cout_p - Cout)).reshape(1, Cout_p).astype(jnp.float32)

    # Pick how many batch rows to fuse per grid step (fill the MXU M dim)
    # while keeping the per-step working set within a conservative VMEM budget.
    if block_b is None:
        item = jnp.dtype(mxu_dtype).itemsize
        per_b = (4 * T_p * (2 * Cin_p + 2 * Cout_p + 2 * F_p)      # i/o + f32 temps
                 + item * T_p * K * (Cin_p + F_p))                 # im2col scratch
        block_b = int(max(1, min(B, (24 * 1024 * 1024) // max(per_b, 1))))
    grid = (pl.cdiv(B, block_b),)

    kernel = _make_ffn_kernel(K, pad, T_p, Cin_p, F_p, Cout_p, mxu_dtype)

    out = pl.pallas_call(
        kernel,
        out_shape=jax.ShapeDtypeStruct((B, T_p, Cout_p), jnp.float32),
        grid=grid,
        in_specs=[
            pl.BlockSpec((block_b, T_p, Cin_p), lambda i: (i, 0, 0)),
            pl.BlockSpec((block_b, T_p, 1), lambda i: (i, 0, 0)),
            pl.BlockSpec(w1p.shape, lambda i: (0, 0)),   # constant index -> no re-fetch
            pl.BlockSpec(b1p.shape, lambda i: (0, 0)),
            pl.BlockSpec(w2p.shape, lambda i: (0, 0)),
            pl.BlockSpec(b2p.shape, lambda i: (0, 0)),
        ],
        out_specs=pl.BlockSpec((block_b, T_p, Cout_p), lambda i: (i, 0, 0)),
        scratch_shapes=[
            pltpu.VMEM((block_b, T_p, K * Cin_p), mxu_dtype),   # im2col buffer, conv_1
            pltpu.VMEM((block_b, T_p, K * F_p), mxu_dtype),     # im2col buffer, conv_2
        ],
        compiler_params=pltpu.CompilerParams(
            dimension_semantics=("parallel",),
            vmem_limit_bytes=vmem_limit_bytes),
    )(xt, mt, w1p, b1p, w2p, b2p)

    # crop lane/sublane padding and return PyTorch NCT layout.
    return jnp.transpose(out[:, :T, :Cout], (0, 2, 1))


def ref_ffn(x, x_mask, w1, b1, w2, b2, *, kernel_size):
    """Pure-JAX reference mirroring the PyTorch module (eval mode)."""
    pad = kernel_size // 2
    dn = ("NCH", "OIH", "NCH")

    def conv(inp, w, b):
        y = lax.conv_general_dilated(inp, w, (1,), [(pad, pad)],
                                     dimension_numbers=dn,
                                     precision=lax.Precision.HIGHEST)
        return y + b[None, :, None]

    h = jnp.maximum(conv(x * x_mask, w1, b1), 0.0)
    return conv(h * x_mask, w2, b2) * x_mask


if __name__ == "__main__":
    key = jax.random.PRNGKey(0)
    B, T = 2, 16
    in_ch = out_ch = 4
    filt = 32
    K = 3

    ks = jax.random.split(key, 6)
    x = jax.random.normal(ks[0], (B, in_ch, T), jnp.float32)          # (B, C_in, T)
    lengths = jnp.array([T, T - 5])
    x_mask = (jnp.arange(T)[None, None, :]
              < lengths[:, None, None]).astype(jnp.float32)           # (B, 1, T)

    w1 = 0.1 * jax.random.normal(ks[1], (filt, in_ch, K), jnp.float32)
    b1 = 0.1 * jax.random.normal(ks[2], (filt,), jnp.float32)
    w2 = 0.1 * jax.random.normal(ks[3], (out_ch, filt, K), jnp.float32)
    b2 = 0.1 * jax.random.normal(ks[4], (out_ch,), jnp.float32)

    out = ffn_pallas(x, x_mask, w1, b1, w2, b2, kernel_size=K)
    out = jax.block_until_ready(out)

    ref = ref_ffn(x, x_mask, w1, b1, w2, b2, kernel_size=K)
    max_err = float(jnp.max(jnp.abs(out - ref)))
    assert jnp.allclose(out, ref, atol=1e-4, rtol=1e-4), max_err
    print("KERNEL_OK")
</pallas_src>

<mosaic_0001>
module attributes {stable_mosaic.version = 11 : i64} {
  func.func @kernel(%arg0: i32, %arg1: memref<2x16x128xf32, #tpu.memory_space<vmem>>, %arg2: memref<2x16x1xf32, #tpu.memory_space<vmem>>, %arg3: memref<384x128xf32, #tpu.memory_space<vmem>>, %arg4: memref<1x128xf32, #tpu.memory_space<vmem>>, %arg5: memref<384x128xf32, #tpu.memory_space<vmem>>, %arg6: memref<1x128xf32, #tpu.memory_space<vmem>>, %arg7: memref<2x16x128xf32, #tpu.memory_space<vmem>>, %arg8: memref<2x16x384xf32, #tpu.memory_space<vmem>>, %arg9: memref<2x16x384xf32, #tpu.memory_space<vmem>>) attributes {dimension_semantics = [#tpu.dimension_semantics<parallel>], iteration_bounds = array<i64: 1>, scalar_prefetch = 0 : i64, scratch_operands = 2 : i64, tpu.core_type = #tpu.core_type<tc>, window_params = [{transform_indices = @transform_0, window_bounds = array<i64: 2, 16, 128>}, {transform_indices = @transform_1, window_bounds = array<i64: 2, 16, 1>}, {pipeline_mode = #tpu.pipeline_mode<synchronous>, transform_indices = @transform_2, window_bounds = array<i64: 384, 128>}, {pipeline_mode = #tpu.pipeline_mode<synchronous>, transform_indices = @transform_3, window_bounds = array<i64: 1, 128>}, {pipeline_mode = #tpu.pipeline_mode<synchronous>, transform_indices = @transform_4, window_bounds = array<i64: 384, 128>}, {pipeline_mode = #tpu.pipeline_mode<synchronous>, transform_indices = @transform_5, window_bounds = array<i64: 1, 128>}, {transform_indices = @transform_6, window_bounds = array<i64: 2, 16, 128>}]} {
    %c0 = arith.constant 0 : index
    %c0_0 = arith.constant 0 : index
    %c0_1 = arith.constant 0 : index
    %0 = vector.load %arg2[%c0, %c0_0, %c0_1] : memref<2x16x1xf32, #tpu.memory_space<vmem>>, vector<2x16x1xf32>
    %c0_2 = arith.constant 0 : index
    %c0_3 = arith.constant 0 : index
    %c0_4 = arith.constant 0 : index
    %1 = vector.load %arg1[%c0_2, %c0_3, %c0_4] : memref<2x16x128xf32, #tpu.memory_space<vmem>>, vector<2x16x128xf32>
    %2 = vector.broadcast %0 : vector<2x16x1xf32> to vector<2x16x128xf32>
    %3 = arith.mulf %1, %2 : vector<2x16x128xf32>
    %cst = arith.constant 0.000000e+00 : f32
    %4 = vector.broadcast %cst : f32 to vector<2x1x128xf32>
    %c0_5 = arith.constant 0 : index
    %c0_6 = arith.constant 0 : index
    %c0_7 = arith.constant 0 : index
    %5 = vector.load %arg8[%c0_5, %c0_6, %c0_7] : memref<2x16x384xf32, #tpu.memory_space<vmem>>, vector<2x1x128xf32>
    tpu.vector_store %arg8[%c0_5, %c0_6, %c0_7], %4 {strides = array<i32>} : memref<2x16x384xf32, #tpu.memory_space<vmem>>, vector<2x1x128xf32>,
    %6 = vector.extract_strided_slice %3 {offsets = [0, 0, 0], sizes = [2, 15, 128], strides = [1, 1, 1]} : vector<2x16x128xf32> to vector<2x15x128xf32>
    %c0_8 = arith.constant 0 : index
    %c1 = arith.constant 1 : index
    %c0_9 = arith.constant 0 : index
    %7 = vector.load %arg8[%c0_8, %c1, %c0_9] : memref<2x16x384xf32, #tpu.memory_space<vmem>>, vector<2x15x128xf32>
    tpu.vector_store %arg8[%c0_8, %c1, %c0_9], %6 {strides = array<i32>} : memref<2x16x384xf32, #tpu.memory_space<vmem>>, vector<2x15x128xf32>,
    %c0_10 = arith.constant 0 : index
    %c0_11 = arith.constant 0 : index
    %c128 = arith.constant 128 : index
    %8 = vector.load %arg8[%c0_10, %c0_11, %c128] : memref<2x16x384xf32, #tpu.memory_space<vmem>>, vector<2x16x128xf32>
    tpu.vector_store %arg8[%c0_10, %c0_11, %c128], %3 {strides = array<i32>} : memref<2x16x384xf32, #tpu.memory_space<vmem>>, vector<2x16x128xf32>,
    %cst_12 = arith.constant 0.000000e+00 : f32
    %9 = vector.broadcast %cst_12 : f32 to vector<2x1x128xf32>
    %c0_13 = arith.constant 0 : index
    %c15 = arith.constant 15 : index
    %c256 = arith.constant 256 : index
    %10 = vector.load %arg8[%c0_13, %c15, %c256] : memref<2x16x384xf32, #tpu.memory_space<vmem>>, vector<2x1x128xf32>
    tpu.vector_store %arg8[%c0_13, %c15, %c256], %9 {strides = array<i32>} : memref<2x16x384xf32, #tpu.memory_space<vmem>>, vector<2x1x128xf32>,
    %11 = vector.extract_strided_slice %3 {offsets = [0, 1, 0], sizes = [2, 15, 128], strides = [1, 1, 1]} : vector<2x16x128xf32> to vector<2x15x128xf32>
    %c0_14 = arith.constant 0 : index
    %c0_15 = arith.constant 0 : index
    %c256_16 = arith.constant 256 : index
    %12 = vector.load %arg8[%c0_14, %c0_15, %c256_16] : memref<2x16x384xf32, #tpu.memory_space<vmem>>, vector<2x15x128xf32>
    tpu.vector_store %arg8[%c0_14, %c0_15, %c256_16], %11 {strides = array<i32>} : memref<2x16x384xf32, #tpu.memory_space<vmem>>, vector<2x15x128xf32>,
    %c0_17 = arith.constant 0 : index
    %c0_18 = arith.constant 0 : index
    %c0_19 = arith.constant 0 : index
    %13 = vector.load %arg8[%c0_17, %c0_18, %c0_19] : memref<2x16x384xf32, #tpu.memory_space<vmem>>, vector<2x16x384xf32>
    %14 = vector.shape_cast %13 : vector<2x16x384xf32> to vector<32x384xf32>
    %c0_20 = arith.constant 0 : index
    %c0_21 = arith.constant 0 : index
    %15 = vector.load %arg3[%c0_20, %c0_21] : memref<384x128xf32, #tpu.memory_space<vmem>>, vector<384x128xf32>
    %cst_22 = arith.constant dense<0.000000e+00> : vector<32x128xf32>
    %16 = tpu.matmul %14, %15, %cst_22 {dimension_numbers = #tpu.dot_dimension_numbers<[1], [0], [0], [1], [0, 0, 1, 1], [], []>} : vector<32x384xf32>, vector<384x128xf32>, vector<32x128xf32> -> vector<32x128xf32>
    %c0_23 = arith.constant 0 : index
    %c0_24 = arith.constant 0 : index
    %17 = vector.load %arg4[%c0_23, %c0_24] : memref<1x128xf32, #tpu.memory_space<vmem>>, vector<1x128xf32>
    %18 = vector.broadcast %17 : vector<1x128xf32> to vector<32x128xf32>
    %19 = arith.addf %16, %18 : vector<32x128xf32>
    %cst_25 = arith.constant 0.000000e+00 : f32
    %20 = vector.broadcast %cst_25 : f32 to vector<32x128xf32>
    %21 = arith.maximumf %19, %20 : vector<32x128xf32>
    %22 = vector.shape_cast %21 : vector<32x128xf32> to vector<2x16x128xf32>
    %23 = vector.broadcast %0 : vector<2x16x1xf32> to vector<2x16x128xf32>
    %24 = arith.mulf %22, %23 : vector<2x16x128xf32>
    %cst_26 = arith.constant 0.000000e+00 : f32
    %25 = vector.broadcast %cst_26 : f32 to vector<2x1x128xf32>
    %c0_27 = arith.constant 0 : index
    %c0_28 = arith.constant 0 : index
    %c0_29 = arith.constant 0 : index
    %26 = vector.load %arg9[%c0_27, %c0_28, %c0_29] : memref<2x16x384xf32, #tpu.memory_space<vmem>>, vector<2x1x128xf32>
    tpu.vector_store %arg9[%c0_27, %c0_28, %c0_29], %25 {strides = array<i32>} : memref<2x16x384xf32, #tpu.memory_space<vmem>>, vector<2x1x128xf32>,
    %27 = vector.extract_strided_slice %24 {offsets = [0, 0, 0], sizes = [2, 15, 128], strides = [1, 1, 1]} : vector<2x16x128xf32> to vector<2x15x128xf32>
    %c0_30 = arith.constant 0 : index
    %c1_31 = arith.constant 1 : index
    %c0_32 = arith.constant 0 : index
    %28 = vector.load %arg9[%c0_30, %c1_31, %c0_32] : memref<2x16x384xf32, #tpu.memory_space<vmem>>, vector<2x15x128xf32>
    tpu.vector_store %arg9[%c0_30, %c1_31, %c0_32], %27 {strides = array<i32>} : memref<2x16x384xf32, #tpu.memory_space<vmem>>, vector<2x15x128xf32>,
    %c0_33 = arith.constant 0 : index
    %c0_34 = arith.constant 0 : index
    %c128_35 = arith.constant 128 : index
    %29 = vector.load %arg9[%c0_33, %c0_34, %c128_35] : memref<2x16x384xf32, #tpu.memory_space<vmem>>, vector<2x16x128xf32>
    tpu.vector_store %arg9[%c0_33, %c0_34, %c128_35], %24 {strides = array<i32>} : memref<2x16x384xf32, #tpu.memory_space<vmem>>, vector<2x16x128xf32>,
    %cst_36 = arith.constant 0.000000e+00 : f32
    %30 = vector.broadcast %cst_36 : f32 to vector<2x1x128xf32>
    %c0_37 = arith.constant 0 : index
    %c15_38 = arith.constant 15 : index
    %c256_39 = arith.constant 256 : index
    %31 = vector.load %arg9[%c0_37, %c15_38, %c256_39] : memref<2x16x384xf32, #tpu.memory_space<vmem>>, vector<2x1x128xf32>
    tpu.vector_store %arg9[%c0_37, %c15_38, %c256_39], %30 {strides = array<i32>} : memref<2x16x384xf32, #tpu.memory_space<vmem>>, vector<2x1x128xf32>,
    %32 = vector.extract_strided_slice %24 {offsets = [0, 1, 0], sizes = [2, 15, 128], strides = [1, 1, 1]} : vector<2x16x128xf32> to vector<2x15x128xf32>
    %c0_40 = arith.constant 0 : index
    %c0_41 = arith.constant 0 : index
    %c256_42 = arith.constant 256 : index
    %33 = vector.load %arg9[%c0_40, %c0_41, %c256_42] : memref<2x16x384xf32, #tpu.memory_space<vmem>>, vector<2x15x128xf32>
    tpu.vector_store %arg9[%c0_40, %c0_41, %c256_42], %32 {strides = array<i32>} : memref<2x16x384xf32, #tpu.memory_space<vmem>>, vector<2x15x128xf32>,
    %c0_43 = arith.constant 0 : index
    %c0_44 = arith.constant 0 : index
    %c0_45 = arith.constant 0 : index
    %34 = vector.load %arg9[%c0_43, %c0_44, %c0_45] : memref<2x16x384xf32, #tpu.memory_space<vmem>>, vector<2x16x384xf32>
    %35 = vector.shape_cast %34 : vector<2x16x384xf32> to vector<32x384xf32>
    %c0_46 = arith.constant 0 : index
    %c0_47 = arith.constant 0 : index
    %36 = vector.load %arg5[%c0_46, %c0_47] : memref<384x128xf32, #tpu.memory_space<vmem>>, vector<384x128xf32>
    %cst_48 = arith.constant dense<0.000000e+00> : vector<32x128xf32>
    %37 = tpu.matmul %35, %36, %cst_48 {dimension_numbers = #tpu.dot_dimension_numbers<[1], [0], [0], [1], [0, 0, 1, 1], [], []>} : vector<32x384xf32>, vector<384x128xf32>, vector<32x128xf32> -> vector<32x128xf32>
    %c0_49 = arith.constant 0 : index
    %c0_50 = arith.constant 0 : index
    %38 = vector.load %arg6[%c0_49, %c0_50] : memref<1x128xf32, #tpu.memory_space<vmem>>, vector<1x128xf32>
    %39 = vector.broadcast %38 : vector<1x128xf32> to vector<32x128xf32>
    %40 = arith.addf %37, %39 : vector<32x128xf32>
    %41 = vector.shape_cast %40 : vector<32x128xf32> to vector<2x16x128xf32>
    %42 = vector.broadcast %0 : vector<2x16x1xf32> to vector<2x16x128xf32>
    %43 = arith.mulf %41, %42 : vector<2x16x128xf32>
    %c0_51 = arith.constant 0 : index
    %c0_52 = arith.constant 0 : index
    %c0_53 = arith.constant 0 : index
    %44 = vector.load %arg7[%c0_51, %c0_52, %c0_53] : memref<2x16x128xf32, #tpu.memory_space<vmem>>, vector<2x16x128xf32>
    tpu.vector_store %arg7[%c0_51, %c0_52, %c0_53], %43 {strides = array<i32>} : memref<2x16x128xf32, #tpu.memory_space<vmem>>, vector<2x16x128xf32>,
    return
  }
  func.func @transform_0(%arg0: i32) -> (i32, i32, i32) {
    %c0_i32 = arith.constant 0 : i32
    %c0_i32_0 = arith.constant 0 : i32
    %c0_i32_1 = arith.constant 0 : i32
    return %arg0, %c0_i32, %c0_i32_0 : i32, i32, i32
  }
  func.func @transform_1(%arg0: i32) -> (i32, i32, i32) {
    %c0_i32 = arith.constant 0 : i32
    %c0_i32_0 = arith.constant 0 : i32
    %c0_i32_1 = arith.constant 0 : i32
    return %arg0, %c0_i32, %c0_i32_0 : i32, i32, i32
  }
  func.func @transform_2(%arg0: i32) -> (i32, i32) {
    %c0_i32 = arith.constant 0 : i32
    %c0_i32_0 = arith.constant 0 : i32
    %c0_i32_1 = arith.constant 0 : i32
    return %c0_i32, %c0_i32_0 : i32, i32
  }
  func.func @transform_3(%arg0: i32) -> (i32, i32) {
    %c0_i32 = arith.constant 0 : i32
    %c0_i32_0 = arith.constant 0 : i32
    %c0_i32_1 = arith.constant 0 : i32
    return %c0_i32, %c0_i32_0 : i32, i32
  }
  func.func @transform_4(%arg0: i32) -> (i32, i32) {
    %c0_i32 = arith.constant 0 : i32
    %c0_i32_0 = arith.constant 0 : i32
    %c0_i32_1 = arith.constant 0 : i32
    return %c0_i32, %c0_i32_0 : i32, i32
  }
  func.func @transform_5(%arg0: i32) -> (i32, i32) {
    %c0_i32 = arith.constant 0 : i32
    %c0_i32_0 = arith.constant 0 : i32
    %c0_i32_1 = arith.constant 0 : i32
    return %c0_i32, %c0_i32_0 : i32, i32
  }
  func.func @transform_6(%arg0: i32) -> (i32, i32, i32) {
    %c0_i32 = arith.constant 0 : i32
    %c0_i32_0 = arith.constant 0 : i32
    %c0_i32_1 = arith.constant 0 : i32
    return %arg0, %c0_i32, %c0_i32_0 : i32, i32, i32
  }
}

</mosaic_0001>

<bundles_post_ra>
// kernel: tpu_custom_call.1
= control target key start
LH: loop header
LB: loop body
LE: loop exit
PB: predicated region body
PF: predicated region fallthrough
CT: control target
= control target key end

     0   :  { %11 = vsyncpa [#allocation5], 0  ;;  %s1234_s0 = inlined_call_operand.vmem [shape: f32[2,16,128], index: 0, kind: input, shape index: {}]   ;;  %s1235_s1 = inlined_call_operand.vmem [shape: f32[2,16,1], index: 1, kind: input, shape index: {}]   ;;  %s1236_s2 = inlined_call_operand.hbm [shape: f32[384,128], index: 2, kind: input, shape index: {}]   ;;  %s1237_s3 = inlined_call_operand.vmem [shape: f32[1,128], index: 3, kind: input, shape index: {}]   ;;  %s1238_s4 = inlined_call_operand.hbm [shape: f32[384,128], index: 4, kind: input, shape index: {}]   ;;  %s1239_s5 = inlined_call_operand.vmem [shape: f32[1,128], index: 5, kind: input, shape index: {}]   ;;  %s1240_s6 = inlined_call_operand.hbm [shape: f32[2,16,128], index: 6, kind: output, shape index: {}]  }
   0x1   :  { %12 = vsyncpa [#allocation8], 0 }
   0x2   :  { %13 = vsyncpa [#allocation6], 0  ;;  %s1089_s21 = smov [#allocation4]   ;;  %s1017_s25 = scalar_lea.hbm %s1236_s2, 6144 }
   0x3   :  { %s23_s22 = sshll.u32 %s1089_s21, 4  ;;  %p1018_p0 = scmp.ne.s32.totalorder %s1236_s2, %s1017_s25  ;;  %s24_s22 = int_to_ptr.vmem [resolvable:$true] %s23_s22 }
   0x4   :  { %p1021_p1 = scmp.lt.u32.totalorder %s1017_s25, %s1236_s2 }
   0x6   :  { %p1023_p2 = pnand %p1021_p1, %p1018_p0 }
   0x8   :  { %1026 = shalt.err (!%p1023_p2)
}
   0x9   :  { %s1027_s30 = scalar_lea.vmem %s24_s22, 6144  ;;  %p1032_p4 = scmp.lt.s32.totalorder %s24_s22, %s24_s22 }
   0xa   :  { %p1028_p3 = scmp.ne.s32.totalorder %s24_s22, %s1027_s30  ;;  %p1033_p5 = scmp.lt.s32.totalorder %s1027_s30, %s1027_s30 }
   0xc   :  { %p1034_p6 = por %p1033_p5, %p1032_p4 }
   0xe   :  { %p1035_p7 = pnand %p1034_p6, %p1028_p3 }
  0x10   :  { %1038 = shalt.err (!%p1035_p7)
}
  0x11   :  { %s1090_s7 = smov 128   ;;  %s1091_s8 = smov 8  }
  0x12   :  { %29 = dma.hbm_to_vmem [thread:$0]  %s1236_s2, 6144, %s24_s22, [#allocation5], %s1090_s7, %s1090_s7, %s1091_s8  }
  0x13   :  { %s1092_s11 = smov [#allocation7]   ;;  %s1039_s15 = scalar_lea.hbm %s1238_s4, 6144 }
  0x14   :  { %s37_s12 = sshll.u32 %s1092_s11, 4  ;;  %p1040_p8 = scmp.ne.s32.totalorder %s1238_s4, %s1039_s15  ;;  %s38_s12 = int_to_ptr.vmem [resolvable:$true] %s37_s12 }
  0x15   :  { %p1043_p9 = scmp.lt.u32.totalorder %s1039_s15, %s1238_s4 }
  0x17   :  { %p1045_p10 = pnand %p1043_p9, %p1040_p8 }
  0x19   :  { %1048 = shalt.err (!%p1045_p10)
}
  0x1a   :  { %s1049_s20 = scalar_lea.vmem %s38_s12, 6144  ;;  %p1054_p12 = scmp.lt.s32.totalorder %s38_s12, %s38_s12 }
  0x1b   :  { %p1050_p11 = scmp.ne.s32.totalorder %s38_s12, %s1049_s20  ;;  %p1055_p13 = scmp.lt.s32.totalorder %s1049_s20, %s1049_s20 }
  0x1d   :  { %p1056_p0 = por %p1055_p13, %p1054_p12 }
  0x1f   :  { %p1057_p1 = pnand %p1056_p0, %p1050_p11 }
  0x21   :  { %1060 = shalt.err (!%p1057_p1)
}
  0x22   :  { %43 = dma.hbm_to_vmem [thread:$0]  %s1238_s4, 6144, %s38_s12, [#allocation8], %s1090_s7, %s1090_s7, %s1091_s8  }
  0x23   :  { %1083 = dma.done.wait [#allocation5], 6144  }
  0x24   :  { %1084 = vsyncadd [#allocation5], 4294961152 }
  0x25   :  { %1085 = dma.done.wait [#allocation8], 6144  }
  0x26   :  { %1086 = vsyncadd [#allocation8], 4294961152  ;;  %v1093_v0 = vmov 0   ;;  %v52_v1 = vld [vmem:[%s1235_s1] sm:$0xff]  ;;  %v54_v2 = vld [vmem:[%s1235_s1 + $0x10] sm:$0xff]  ;;  %v1094_v21 = vmov 0.0  }
  0x27   :  { %1015 = vset.pattern.permute.xlu0 %v1093_v0  ;;  %1016 = vset.pattern.permute.xlu1 %v1093_v0  ;;  %v53_v3 = vld [vmem:[%s1235_s1 + $0x8] sm:$0xff]  ;;  %v55_v4 = vld [vmem:[%s1235_s1 + $0x18] sm:$0xff]  ;;  %v154_v5 = vld [vmem:[#allocation4 + $0x80] sm:$0xff]  ;;  %84 = vst [vmem:[#allocation2] sm:$0x1] %v1094_v21  ;;  %vm90_vm0 = vcmask 1040384  }
  0x28   :  { %62 = vperm.xlu0 %1015, %v52_v1   ;;  %72 = vperm.xlu1 %1016, %v54_v2   ;;  %v155_v6 = vld [vmem:[#allocation4 + $0x88] sm:$0xff]  ;;  %v138_v8 = vld [vmem:[#allocation4] sm:$0xff]  ;;  %v156_v10 = vld [vmem:[#allocation4 + $0x90] sm:$0xff]  ;;  %85 = vst [vmem:[#allocation2 + $0x30] sm:$0x1] %v1094_v21  ;;  %vm111_vm1 = vcmask 1046528  }
  0x29   :  { %v880_v7 = vpack.c.bf16 %v155_v6, %v154_v5  ;;  %v139_v9 = vld [vmem:[#allocation4 + $0x8] sm:$0xff]  ;;  %v157_v12 = vld [vmem:[#allocation4 + $0x98] sm:$0xff]  ;;  %v140_v13 = vld [vmem:[#allocation4 + $0x10] sm:$0xff]  ;;  %109 = vst [vmem:[#allocation2 + $0x2f] sm:$0x1] %v1094_v21 }
  0x2a   :  { %v882_v11 = vpack.c.bf16 %v139_v9, %v138_v8  ;;  %v141_v14 = vld [vmem:[#allocation4 + $0x18] sm:$0xff]  ;;  %v884_v15 = vpack.c.bf16 %v157_v12, %v156_v10  ;;  %v170_v16 = vld [vmem:[#allocation4 + $0x100] sm:$0xff]  ;;  %v171_v17 = vld [vmem:[#allocation4 + $0x108] sm:$0xff]  ;;  %110 = vst [vmem:[#allocation2 + $0x5f] sm:$0x1] %v1094_v21 }
  0x2b   :  { %881 = vmatprep.subr.bf16.mxu0 %v880_v7  ;;  %v158_v18 = vld [vmem:[#allocation4 + $0xa0] sm:$0xff]  ;;  %v912_v19 = vpack.c.bf16 %v171_v17, %v170_v16  ;;  %v159_v20 = vld [vmem:[#allocation4 + $0xa8] sm:$0xff]  ;;  %371 = vst [vmem:[#allocation3] sm:$0x1] %v1094_v21  ;;  %372 = vst [vmem:[#allocation3 + $0x30] sm:$0x1] %v1094_v21  ;;  %v886_v22 = vpack.c.bf16 %v141_v14, %v140_v13 }
  0x2c   :  { %67 = vperm.xlu0 %1015, %v53_v3   ;;  %77 = vperm.xlu1 %1016, %v55_v4   ;;  %395 = vst [vmem:[#allocation3 + $0x2f] sm:$0x1] %v1094_v21  ;;  %396 = vst [vmem:[#allocation3 + $0x5f] sm:$0x1] %v1094_v21  ;;  %v172_v23 = vld [vmem:[#allocation4 + $0x110] sm:$0xff]  ;;  %v173_v24 = vld [vmem:[#allocation4 + $0x118] sm:$0xff]  ;;  %v888_v25 = vpack.c.bf16 %v159_v20, %v158_v18 }
  0x2d   :  { %883 = vmatpush3.bf16.msra.mxu0 %v882_v11  ;;  %913 = vmatprep.subr.bf16.mxu1 %v912_v19  ;;  %v142_v26 = vld [vmem:[#allocation4 + $0x20] sm:$0xff]  ;;  %v143_v27 = vld [vmem:[#allocation4 + $0x28] sm:$0xff]  ;;  %v916_v28 = vpack.c.bf16 %v173_v24, %v172_v23  ;;  %v160_v29 = vld [vmem:[#allocation4 + $0xb0] sm:$0xff] }
  0x2e   :  { %885 = vmatprep.subr.bf16.mxu0 %v884_v15  ;;  %915 = vmatpush3.bf16.msra.mxu1 %v912_v19  ;;  %v161_v30 = vld [vmem:[#allocation4 + $0xb8] sm:$0xff]  ;;  %v174_v31 = vld [vmem:[#allocation4 + $0x120] sm:$0xff]  ;;  %v175_v32 = vld [vmem:[#allocation4 + $0x128] sm:$0xff]  ;;  %v890_v34 = vpack.c.bf16 %v143_v27, %v142_v26 }
  0x2f   :  { %917 = vmatprep.subr.bf16.mxu1 %v916_v28  ;;  %v920_v33 = vpack.c.bf16 %v175_v32, %v174_v31  ;;  %v176_v35 = vld [vmem:[#allocation4 + $0x130] sm:$0xff]  ;;  %v177_v36 = vld [vmem:[#allocation4 + $0x138] sm:$0xff]  ;;  %v892_v37 = vpack.c.bf16 %v161_v30, %v160_v29  ;;  %v162_v40 = vld [vmem:[#allocation4 + $0xc0] sm:$0xff] }
  0x30   :  { %v144_v38 = vld [vmem:[#allocation4 + $0x30] sm:$0xff]  ;;  %v145_v39 = vld [vmem:[#allocation4 + $0x38] sm:$0xff]  ;;  %v163_v41 = vld [vmem:[#allocation4 + $0xc8] sm:$0xff]  ;;  %v924_v42 = vpack.c.bf16 %v177_v36, %v176_v35 }
  0x31   :  { %887 = vmatpush3.bf16.msra.mxu0 %v886_v22  ;;  %v894_v43 = vpack.c.bf16 %v145_v39, %v144_v38  ;;  %v178_v44 = vld [vmem:[#allocation4 + $0x140] sm:$0xff]  ;;  %v179_v45 = vld [vmem:[#allocation4 + $0x148] sm:$0xff]  ;;  %v896_v46 = vpack.c.bf16 %v163_v41, %v162_v40  ;;  %v164_v49 = vld [vmem:[#allocation4 + $0xd0] sm:$0xff] }
  0x32   :  { %889 = vmatprep.subr.bf16.mxu0 %v888_v25  ;;  %919 = vmatpush3.bf16.msra.mxu1 %v916_v28  ;;  %v146_v47 = vld [vmem:[#allocation4 + $0x40] sm:$0xff]  ;;  %v147_v48 = vld [vmem:[#allocation4 + $0x48] sm:$0xff]  ;;  %v165_v50 = vld [vmem:[#allocation4 + $0xd8] sm:$0xff]  ;;  %v928_v51 = vpack.c.bf16 %v179_v45, %v178_v44 }
  0x33   :  { %921 = vmatprep.subr.bf16.mxu1 %v920_v33  ;;  %v898_v52 = vpack.c.bf16 %v147_v48, %v146_v47  ;;  %v180_v53 = vld [vmem:[#allocation4 + $0x150] sm:$0xff]  ;;  %v181_v54 = vld [vmem:[#allocation4 + $0x158] sm:$0xff]  ;;  %v900_v55 = vpack.c.bf16 %v165_v50, %v164_v49  ;;  %v166_v58 = vld [vmem:[#allocation4 + $0xe0] sm:$0xff] }
  0x34   :  { %v148_v56 = vld [vmem:[#allocation4 + $0x50] sm:$0xff]  ;;  %v149_v57 = vld [vmem:[#allocation4 + $0x58] sm:$0xff]  ;;  %v167_v59 = vld [vmem:[#allocation4 + $0xe8] sm:$0xff]  ;;  %v932_v60 = vpack.c.bf16 %v181_v54, %v180_v53 }
  0x35   :  { %891 = vmatpush3.bf16.msra.mxu0 %v890_v34  ;;  %v902_v61 = vpack.c.bf16 %v149_v57, %v148_v56  ;;  %v182_v62 = vld [vmem:[#allocation4 + $0x160] sm:$0xff]  ;;  %v183_v63 = vld [vmem:[#allocation4 + $0x168] sm:$0xff]  ;;  %v904_v0 = vpack.c.bf16 %v167_v59, %v166_v58  ;;  %v168_v3 = vld [vmem:[#allocation4 + $0xf0] sm:$0xff] }
  0x36   :  { %893 = vmatprep.subr.bf16.mxu0 %v892_v37  ;;  %923 = vmatpush3.bf16.msra.mxu1 %v920_v33  ;;  %v150_v1 = vld [vmem:[#allocation4 + $0x60] sm:$0xff]  ;;  %v151_v2 = vld [vmem:[#allocation4 + $0x68] sm:$0xff]  ;;  %v169_v4 = vld [vmem:[#allocation4 + $0xf8] sm:$0xff]  ;;  %v936_v5 = vpack.c.bf16 %v183_v63, %v182_v62 }
  0x37   :  { %925 = vmatprep.subr.bf16.mxu1 %v924_v42  ;;  %v906_v6 = vpack.c.bf16 %v151_v2, %v150_v1  ;;  %v184_v7 = vld [vmem:[#allocation4 + $0x170] sm:$0xff]  ;;  %v185_v8 = vld [vmem:[#allocation4 + $0x178] sm:$0xff]  ;;  %v908_v9 = vpack.c.bf16 %v169_v4, %v168_v3  ;;  %v439_v12 = vld [vmem:[#allocation7 + $0x80] sm:$0xff] }
  0x38   :  { %v152_v10 = vld [vmem:[#allocation4 + $0x70] sm:$0xff]  ;;  %v153_v11 = vld [vmem:[#allocation4 + $0x78] sm:$0xff]  ;;  %v440_v13 = vld [vmem:[#allocation7 + $0x88] sm:$0xff]  ;;  %v940_v14 = vpack.c.bf16 %v185_v8, %v184_v7 }
  0x39   :  { %895 = vmatpush3.bf16.msra.mxu0 %v894_v43  ;;  %v910_v15 = vpack.c.bf16 %v153_v11, %v152_v10  ;;  %v455_v16 = vld [vmem:[#allocation7 + $0x100] sm:$0xff]  ;;  %v456_v17 = vld [vmem:[#allocation7 + $0x108] sm:$0xff]  ;;  %v944_v18 = vpack.c.bf16 %v440_v13, %v439_v12  ;;  %v58_v21 = vld [vmem:[%s1234_s0 + $0x10] sm:$0xff] }
  0x3a   :  { %897 = vmatprep.subr.bf16.mxu0 %v896_v46  ;;  %927 = vmatpush3.bf16.msra.mxu1 %v924_v42  ;;  %v976_v19 = vpack.c.bf16 %v456_v17, %v455_v16  ;;  %v56_v20 = vld [vmem:[%s1234_s0] sm:$0xff]  ;;  %v57_v26 = vld [vmem:[%s1234_s0 + $0x8] sm:$0xff]  ;;  %v59_v27 = vld [vmem:[%s1234_s0 + $0x18] sm:$0xff] }
  0x3b   :  { %929 = vmatprep.subr.bf16.mxu1 %v928_v51  ;;  %v423_v40 = vld [vmem:[#allocation7] sm:$0xff]  ;;  %v424_v41 = vld [vmem:[#allocation7 + $0x8] sm:$0xff]  ;;  %v441_v42 = vld [vmem:[#allocation7 + $0x90] sm:$0xff] }
  0x3c   :  { %v442_v43 = vld [vmem:[#allocation7 + $0x98] sm:$0xff]  ;;  %v946_v48 = vpack.c.bf16 %v424_v41, %v423_v40  ;;  %v443_v57 = vld [vmem:[#allocation7 + $0xa0] sm:$0xff]  ;;  %v444_v58 = vld [vmem:[#allocation7 + $0xa8] sm:$0xff] }
  0x3d   :  { %899 = vmatpush3.bf16.msra.mxu0 %v898_v52  ;;  %v948_v49 = vpack.c.bf16 %v442_v43, %v441_v42  ;;  %v426_v52 = vld [vmem:[#allocation7 + $0x18] sm:$0xff]  ;;  %v457_v59 = vld [vmem:[#allocation7 + $0x110] sm:$0xff]  ;;  %v428_v62 = vld [vmem:[#allocation7 + $0x28] sm:$0xff] }
  0x3e   :  { %901 = vmatprep.subr.bf16.mxu0 %v900_v55  ;;  %931 = vmatpush3.bf16.msra.mxu1 %v928_v51  ;;  %v425_v51 = vld [vmem:[#allocation7 + $0x10] sm:$0xff]  ;;  %v458_v63 = vld [vmem:[#allocation7 + $0x118] sm:$0xff]  ;;  %v459_v4 = vld [vmem:[#allocation7 + $0x120] sm:$0xff] }
  0x3f   :  { %933 = vmatprep.subr.bf16.mxu1 %v932_v60  ;;  %v950_v53 = vpack.c.bf16 %v426_v52, %v425_v51  ;;  %v980_v1 = vpack.c.bf16 %v458_v63, %v457_v59  ;;  %v445_v2 = vld [vmem:[#allocation7 + $0xb0] sm:$0xff]  ;;  %v446_v3 = vld [vmem:[#allocation7 + $0xb8] sm:$0xff]  ;;  %v460_v8 = vld [vmem:[#allocation7 + $0x128] sm:$0xff] }
  0x40   :  { %v430_v7 = vld [vmem:[#allocation7 + $0x38] sm:$0xff]  ;;  %v984_v10 = vpack.c.bf16 %v460_v8, %v459_v4  ;;  %v447_v11 = vld [vmem:[#allocation7 + $0xc0] sm:$0xff]  ;;  %v448_v12 = vld [vmem:[#allocation7 + $0xc8] sm:$0xff] }
  0x41   :  { %903 = vmatpush3.bf16.msra.mxu0 %v902_v61  ;;  %v427_v61 = vld [vmem:[#allocation7 + $0x20] sm:$0xff]  ;;  %v960_v13 = vpack.c.bf16 %v448_v12, %v447_v11  ;;  %v461_v16 = vld [vmem:[#allocation7 + $0x130] sm:$0xff]  ;;  %v454_v43 = vld [vmem:[#allocation7 + $0xf8] sm:$0xff] }
  0x42   :  { %905 = vmatprep.subr.bf16.mxu0 %v904_v0  ;;  %935 = vmatpush3.bf16.msra.mxu1 %v932_v60  ;;  %v952_v60 = vpack.c.bf16 %v444_v58, %v443_v57  ;;  %v954_v0 = vpack.c.bf16 %v428_v62, %v427_v61  ;;  %v453_v42 = vld [vmem:[#allocation7 + $0xf0] sm:$0xff]  ;;  %v470_v52 = vld [vmem:[#allocation7 + $0x178] sm:$0xff] }
  0x43   :  { %937 = vmatprep.subr.bf16.mxu1 %v936_v5  ;;  %v469_v51 = vld [vmem:[#allocation7 + $0x170] sm:$0xff] }
  0x45   :  { %907 = vmatpush3.bf16.msra.mxu0 %v906_v6  ;;  %v429_v6 = vld [vmem:[#allocation7 + $0x30] sm:$0xff] }
  0x46   :  { %909 = vmatprep.subr.bf16.mxu0 %v908_v9  ;;  %939 = vmatpush3.bf16.msra.mxu1 %v936_v5  ;;  %v956_v5 = vpack.c.bf16 %v446_v3, %v445_v2  ;;  %v958_v9 = vpack.c.bf16 %v430_v7, %v429_v6 }
  0x47   :  { %941 = vmatprep.subr.bf16.mxu1 %v940_v14 }
  0x49   :  { %911 = vmatpush3.bf16.msra.mxu0 %v910_v15  ;;  %v432_v15 = vld [vmem:[#allocation7 + $0x48] sm:$0xff] }
  0x4a   :  { %945 = vmatprep.subr.bf16.mxu0 %v944_v18  ;;  %943 = vmatpush3.bf16.msra.mxu1 %v940_v14  ;;  %v431_v14 = vld [vmem:[#allocation7 + $0x40] sm:$0xff]  ;;  %v462_v18 = vld [vmem:[#allocation7 + $0x138] sm:$0xff] }
  0x4b   :  { %977 = vmatprep.subr.bf16.mxu1 %v976_v19  ;;  %v962_v17 = vpack.c.bf16 %v432_v15, %v431_v14 }
  0xa7   :  { %v1179_v22 = vpop.permute.xlu0 %62  ;;  %v1181_v23 = vpop.permute.xlu1 %72 }
  0xa8   :  { %v80_v24 = vmul.f32 %v1179_v22, %v56_v20  ;;  %v82_v25 = vmul.f32 %v1181_v23, %v58_v21  ;;  %v449_v20 = vld [vmem:[#allocation7 + $0xd0] sm:$0xff]  ;;  %v450_v21 = vld [vmem:[#allocation7 + $0xd8] sm:$0xff] }
  0xaa   :  { %v91_v28 = vrot.slane %v80_v24, 7  ;;  %v94_v29 = vrot.slane %v82_v25, 7  ;;  %257 = vmatprep.mubr.f32.mxu0 %v80_v24  ;;  %v115_v32 = vrot.slane %v82_v25, 1  ;;  %v112_v35 = vrot.slane %v80_v24, 1  ;;  %v463_v24 = vld [vmem:[#allocation7 + $0x140] sm:$0xff] }
  0xab   :  { %v1191_v30 = vpop.permute.xlu0 %67  ;;  %v1193_v31 = vpop.permute.xlu1 %77 }
  0xac   :  { %101 = vst [vmem:[#allocation2] sm:$0xfe] %v91_v28  ;;  %103 = vst [vmem:[#allocation2 + $0x30] sm:$0xfe] %v94_v29  ;;  %v81_v33 = vmul.f32 %v1191_v30, %v57_v26  ;;  %v83_v34 = vmul.f32 %v1193_v31, %v59_v27  ;;  %v433_v26 = vld [vmem:[#allocation7 + $0x50] sm:$0xff]  ;;  %v434_v27 = vld [vmem:[#allocation7 + $0x58] sm:$0xff] }
  0xae   :  { %v92_v36 = vrot.slane %v81_v33, 7  ;;  %v113_v37 = vrot.slane %v81_v33, 1  ;;  %v95_v38 = vrot.slane %v83_v34, 7  ;;  %v116_v39 = vrot.slane %v83_v34, 1 }
  0xb0   :  { %v93_v44 = vsel %vm90_vm0, %v91_v28, %v92_v36  ;;  %v114_v45 = vsel %vm111_vm1, %v112_v35, %v113_v37  ;;  %123 = vst [vmem:[#allocation2 + $0x28] sm:$0x7f] %v113_v37  ;;  %v96_v46 = vsel %vm90_vm0, %v94_v29, %v95_v38  ;;  %v117_v47 = vsel %vm111_vm1, %v115_v32, %v116_v39  ;;  %v464_v28 = vld [vmem:[#allocation7 + $0x148] sm:$0xff]  ;;  %v465_v35 = vld [vmem:[#allocation7 + $0x150] sm:$0xff]  ;;  %v435_v37 = vld [vmem:[#allocation7 + $0x60] sm:$0xff] }
  0xb1   :  { %125 = vst [vmem:[#allocation2 + $0x58] sm:$0x7f] %v116_v39  ;;  %836 = vmatprep.mubr.f32.mxu1 %v114_v45  ;;  %v966_v29 = vpack.c.bf16 %v434_v27, %v433_v26  ;;  %v992_v32 = vpack.c.bf16 %v464_v28, %v463_v24  ;;  %v436_v38 = vld [vmem:[#allocation7 + $0x68] sm:$0xff]  ;;  %v466_v39 = vld [vmem:[#allocation7 + $0x158] sm:$0xff]  ;;  %v972_v45 = vpack.c.bf16 %v454_v43, %v453_v42 }
  0xb2   :  { %v970_v40 = vpack.c.bf16 %v436_v38, %v435_v37  ;;  %v996_v41 = vpack.c.bf16 %v466_v39, %v465_v35 }
  0xb3   :  { %v126_v50 = vld [vmem:[#allocation2] sm:$0xff]  ;;  %v132_v55 = vld [vmem:[#allocation2 + $0x30] sm:$0xff] }
  0xb4   :  { %258 = vmatmul.mubr.f32.vlgmr.msra.gmra.mrb[0].mxu0 %v126_v50 }
  0xb5   :  { %262 = vmatprep.mubr.f32.mxu0 %v81_v33  ;;  %947 = vmatpush3.bf16.msra.mxu0 %v946_v48  ;;  %v451_v33 = vld [vmem:[#allocation7 + $0xe0] sm:$0xff]  ;;  %v468_v48 = vld [vmem:[#allocation7 + $0x168] sm:$0xff] }
  0xb6   :  { %949 = vmatprep.subr.bf16.mxu0 %v948_v49 }
  0xb7   :  { %v131_v54 = vld [vmem:[#allocation2 + $0x28] sm:$0xff] }
  0xb8   :  { %263 = vmatmul.mubr.f32.gmra.mrb[2].mxu0 %v93_v44  ;;  %837 = vmatmul.mubr.f32.vlgmr.msra.gmra.mrb[0].mxu1 %v131_v54  ;;  %v137_v56 = vld [vmem:[#allocation2 + $0x58] sm:$0xff]  ;;  %v467_v44 = vld [vmem:[#allocation7 + $0x160] sm:$0xff] }
  0xb9   :  { %267 = vmatprep.mubr.f32.mxu0 %v82_v25  ;;  %839 = vmatprep.mubr.f32.mxu1 %v117_v47  ;;  %v964_v25 = vpack.c.bf16 %v450_v21, %v449_v20  ;;  %v438_v47 = vld [vmem:[#allocation7 + $0x78] sm:$0xff]  ;;  %v1000_v50 = vpack.c.bf16 %v468_v48, %v467_v44 }
  0xba   :  { %951 = vmatpush3.bf16.msra.mxu0 %v950_v53  ;;  %979 = vmatpush3.bf16.msra.mxu1 %v976_v19  ;;  %v988_v19 = vpack.c.bf16 %v462_v18, %v461_v16  ;;  %v1004_v53 = vpack.c.bf16 %v470_v52, %v469_v51 }
  0xbb   :  { %953 = vmatprep.subr.bf16.mxu0 %v952_v60  ;;  %981 = vmatprep.subr.bf16.mxu1 %v980_v1 }
  0xbc   :  { %268 = vmatmul.mubr.f32.gmra.mrb[4].mxu0 %v132_v55  ;;  %840 = vmatmul.mubr.f32.gmra.mrb[2].mxu1 %v137_v56  ;;  %v674_v56 = vld [vmem:[%s1237_s3] ss:$0 sm:$0xff] }
  0xbd   :  { %272 = vmatprep.mubr.f32.mxu0 %v83_v34  ;;  %v452_v34 = vld [vmem:[#allocation7 + $0xe8] sm:$0xff] }
  0xbe   :  { %955 = vmatpush3.bf16.msra.mxu0 %v954_v0  ;;  %983 = vmatpush3.bf16.msra.mxu1 %v980_v1  ;;  %v968_v36 = vpack.c.bf16 %v452_v34, %v451_v33 }
  0xbf   :  { %957 = vmatprep.subr.bf16.mxu0 %v956_v5  ;;  %985 = vmatprep.subr.bf16.mxu1 %v984_v10 }
  0xc0   :  { %273 = vmatmul.mubr.f32.gmra.mrb[6].mxu0 %v96_v46  ;;  %v437_v46 = vld [vmem:[#allocation7 + $0x70] sm:$0xff] }
  0xc1   :  { %v974_v49 = vpack.c.bf16 %v438_v47, %v437_v46 }
  0xc2   :  { %959 = vmatpush3.bf16.msra.mxu0 %v958_v9  ;;  %987 = vmatpush3.bf16.msra.mxu1 %v984_v10 }
  0xc3   :  { %961 = vmatprep.subr.bf16.mxu0 %v960_v13  ;;  %989 = vmatprep.subr.bf16.mxu1 %v988_v19 }
  0xc6   :  { %963 = vmatpush3.bf16.msra.mxu0 %v962_v17  ;;  %991 = vmatpush3.bf16.msra.mxu1 %v988_v19 }
  0xc7   :  { %965 = vmatprep.subr.bf16.mxu0 %v964_v25  ;;  %993 = vmatprep.subr.bf16.mxu1 %v992_v32 }
  0xca   :  { %967 = vmatpush3.bf16.msra.mxu0 %v966_v29  ;;  %995 = vmatpush3.bf16.msra.mxu1 %v992_v32 }
  0xcb   :  { %969 = vmatprep.subr.bf16.mxu0 %v968_v36  ;;  %997 = vmatprep.subr.bf16.mxu1 %v996_v41 }
  0xce   :  { %971 = vmatpush3.bf16.msra.mxu0 %v970_v40  ;;  %999 = vmatpush3.bf16.msra.mxu1 %v996_v41 }
  0xcf   :  { %973 = vmatprep.subr.bf16.mxu0 %v972_v45  ;;  %1001 = vmatprep.subr.bf16.mxu1 %v1000_v50  ;;  %v675_v45 = vld [vmem:[%s1239_s5] ss:$0 sm:$0xff]  ;;  %s1095_s5 = smov [#allocation9]  }
  0xd0   :  { %s661_s16 = sshll.u32 %s1095_s5, 4  ;;  %s662_s16 = int_to_ptr.vmem [resolvable:$true] %s661_s16 }
  0xd1   :  { %s1061_s17 = scalar_lea.vmem %s662_s16, 512  ;;  %p1066_p3 = scmp.lt.s32.totalorder %s662_s16, %s662_s16 }
  0xd2   :  { %975 = vmatpush3.bf16.msra.mxu0 %v974_v49  ;;  %1003 = vmatpush3.bf16.msra.mxu1 %v1000_v50  ;;  %p1062_p2 = scmp.ne.s32.totalorder %s662_s16, %s1061_s17  ;;  %p1067_p4 = scmp.lt.s32.totalorder %s1061_s17, %s1061_s17 }
  0xd3   :  { %1005 = vmatprep.subr.bf16.mxu1 %v1004_v53 }
  0xd4   :  { %p1068_p5 = por %p1067_p4, %p1066_p3 }
  0xd6   :  { %1007 = vmatpush3.bf16.msra.mxu1 %v1004_v53  ;;  %p1069_p6 = pnand %p1068_p5, %p1062_p2 }
 0x187   :  { %v708_v54 = vpop.f32.mrb[0].mxu0 }
 0x188   :  { %v709_v55 = vpop.f32.mrb[1].mxu0 }
 0x189   :  { %v710_v57 = vadd.f32 %v709_v55, %v708_v54 }
 0x18b   :  { %v711_v58 = vpop.f32.mrb[2].mxu0  ;;  %v838_v59 = vpop.f32.mrb[0].mxu1  ;;  %v260_v60 = vadd.f32 %v710_v57, %v674_v56 }
 0x18c   :  { %v712_v61 = vpop.f32.mrb[3].mxu0  ;;  %v344_v62 = vpop.f32.mrb[1].mxu1 }
 0x18d   :  { %v713_v63 = vadd.f32 %v712_v61, %v711_v58  ;;  %v345_v0 = vadd.f32 %v344_v62, %v260_v60 }
 0x18f   :  { %v265_v1 = vadd.f32 %v713_v63, %v674_v56  ;;  %v363_v2 = vmax.f32 %v345_v0, 0.0  ;;  %v714_v3 = vpop.f32.mrb[4].mxu0  ;;  %v841_v4 = vpop.f32.mrb[2].mxu1 }
 0x190   :  { %v715_v5 = vpop.f32.mrb[5].mxu0  ;;  %v354_v6 = vpop.f32.mrb[3].mxu1 }
 0x191   :  { %v350_v7 = vadd.f32 %v838_v59, %v265_v1  ;;  %v367_v8 = vmul.f32 %v363_v2, %v1179_v22  ;;  %v716_v9 = vadd.f32 %v715_v5, %v714_v3 }
 0x193   :  { %v364_v10 = vmax.f32 %v350_v7, 0.0  ;;  %v377_v11 = vrot.slane %v367_v8, 7  ;;  %v270_v12 = vadd.f32 %v716_v9, %v674_v56  ;;  %v717_v13 = vpop.f32.mrb[6].mxu0  ;;  %542 = vmatprep.mubr.f32.mxu0 %v367_v8  ;;  %v397_v18 = vrot.slane %v367_v8, 1 }
 0x194   :  { %v718_v14 = vpop.f32.mrb[7].mxu0 }
 0x195   :  { %v368_v15 = vmul.f32 %v364_v10, %v1191_v30  ;;  %387 = vst [vmem:[#allocation3] sm:$0xfe] %v377_v11  ;;  %v355_v16 = vadd.f32 %v354_v6, %v270_v12  ;;  %v719_v17 = vadd.f32 %v718_v14, %v717_v13 }
 0x197   :  { %v378_v19 = vrot.slane %v368_v15, 7  ;;  %v398_v20 = vrot.slane %v368_v15, 1  ;;  %v365_v21 = vmax.f32 %v355_v16, 0.0  ;;  %v275_v24 = vadd.f32 %v719_v17, %v674_v56 }
 0x199   :  { %408 = vst [vmem:[#allocation3 + $0x28] sm:$0x7f] %v398_v20  ;;  %v379_v25 = vsel %vm90_vm0, %v377_v11, %v378_v19  ;;  %v399_v26 = vsel %vm111_vm1, %v397_v18, %v398_v20  ;;  %v369_v27 = vmul.f32 %v365_v21, %v1181_v23  ;;  %v360_v28 = vadd.f32 %v841_v4, %v275_v24 }
 0x19a   :  { %874 = vmatprep.mubr.f32.mxu1 %v399_v26 }
 0x19b   :  { %v380_v29 = vrot.slane %v369_v27, 7  ;;  %v366_v32 = vmax.f32 %v360_v28, 0.0  ;;  %v400_v35 = vrot.slane %v369_v27, 1 }
 0x19c   :  { %v411_v33 = vld [vmem:[#allocation3] sm:$0xff] }
 0x19d   :  { %389 = vst [vmem:[#allocation3 + $0x30] sm:$0xfe] %v380_v29  ;;  %v370_v34 = vmul.f32 %v366_v32, %v1193_v31  ;;  %543 = vmatmul.mubr.f32.vlgmr.msra.gmra.mrb[8].mxu0 %v411_v33 }
 0x19e   :  { %547 = vmatprep.mubr.f32.mxu0 %v368_v15 }
 0x19f   :  { %v381_v36 = vrot.slane %v370_v34, 7  ;;  %v401_v37 = vrot.slane %v370_v34, 1 }
 0x1a0   :  { %v416_v38 = vld [vmem:[#allocation3 + $0x28] sm:$0xff] }
 0x1a1   :  { %v382_v39 = vsel %vm90_vm0, %v380_v29, %v381_v36  ;;  %v402_v40 = vsel %vm111_vm1, %v400_v35, %v401_v37  ;;  %410 = vst [vmem:[#allocation3 + $0x58] sm:$0x7f] %v401_v37  ;;  %548 = vmatmul.mubr.f32.gmra.mrb[10].mxu0 %v379_v25  ;;  %875 = vmatmul.mubr.f32.vlgmr.msra.gmra.mrb[4].mxu1 %v416_v38 }
 0x1a2   :  { %552 = vmatprep.mubr.f32.mxu0 %v369_v27  ;;  %877 = vmatprep.mubr.f32.mxu1 %v402_v40 }
 0x1a4   :  { %v417_v41 = vld [vmem:[#allocation3 + $0x30] sm:$0xff] }
 0x1a5   :  { %553 = vmatmul.mubr.f32.gmra.mrb[12].mxu0 %v417_v41 }
 0x1a6   :  { %557 = vmatprep.mubr.f32.mxu0 %v370_v34 }
 0x1a8   :  { %v422_v42 = vld [vmem:[#allocation3 + $0x58] sm:$0xff] }
 0x1a9   :  { %558 = vmatmul.mubr.f32.gmra.mrb[14].mxu0 %v382_v39  ;;  %878 = vmatmul.mubr.f32.gmra.mrb[6].mxu1 %v422_v42 }
 0x270   :  { %v772_v43 = vpop.f32.mrb[8].mxu0 }
 0x271   :  { %v773_v44 = vpop.f32.mrb[9].mxu0 }
 0x272   :  { %v774_v46 = vadd.f32 %v773_v44, %v772_v43 }
 0x274   :  { %v775_v47 = vpop.f32.mrb[10].mxu0  ;;  %v876_v48 = vpop.f32.mrb[4].mxu1  ;;  %v545_v49 = vadd.f32 %v774_v46, %v675_v45 }
 0x275   :  { %v776_v50 = vpop.f32.mrb[11].mxu0  ;;  %v629_v51 = vpop.f32.mrb[5].mxu1 }
 0x276   :  { %v777_v52 = vadd.f32 %v776_v50, %v775_v47  ;;  %v630_v53 = vadd.f32 %v629_v51, %v545_v49 }
 0x278   :  { %v550_v54 = vadd.f32 %v777_v52, %v675_v45  ;;  %v648_v55 = vmul.f32 %v630_v53, %v1179_v22  ;;  %v778_v56 = vpop.f32.mrb[12].mxu0 }
 0x279   :  { %v779_v57 = vpop.f32.mrb[13].mxu0 }
 0x27a   :  { %v635_v58 = vadd.f32 %v876_v48, %v550_v54  ;;  %652 = vst [vmem:[#allocation9] sm:$0xff] %v648_v55  ;;  %v780_v59 = vadd.f32 %v779_v57, %v778_v56 }
 0x27c   :  { %v649_v60 = vmul.f32 %v635_v58, %v1191_v30  ;;  %v781_v61 = vpop.f32.mrb[14].mxu0  ;;  %v879_v62 = vpop.f32.mrb[6].mxu1  ;;  %v555_v63 = vadd.f32 %v780_v59, %v675_v45 }
 0x27d   :  { %v782_v0 = vpop.f32.mrb[15].mxu0  ;;  %v639_v1 = vpop.f32.mrb[7].mxu1 }
 0x27e   :  { %653 = vst [vmem:[#allocation9 + $0x8] sm:$0xff] %v649_v60  ;;  %v783_v2 = vadd.f32 %v782_v0, %v781_v61  ;;  %v640_v3 = vadd.f32 %v639_v1, %v555_v63 }
 0x280   :  { %v560_v4 = vadd.f32 %v783_v2, %v675_v45  ;;  %v650_v5 = vmul.f32 %v640_v3, %v1181_v23 }
 0x282   :  { %v645_v22 = vadd.f32 %v879_v62, %v560_v4  ;;  %654 = vst [vmem:[#allocation9 + $0x10] sm:$0xff] %v650_v5 }
 0x284   :  { %v651_v6 = vmul.f32 %v645_v22, %v1193_v31 }
 0x286   :  { %655 = vst [vmem:[#allocation9 + $0x18] sm:$0xff] %v651_v6 }
 0x287   :  { %1072 = shalt.err (!%p1069_p6)
}
 0x288   :  { %s1073_s20 = scalar_lea.hbm %s1240_s6, 512 }
 0x289   :  { %p1074_p7 = scmp.ne.s32.totalorder %s1240_s6, %s1073_s20  ;;  %p1077_p8 = scmp.lt.u32.totalorder %s1073_s20, %s1240_s6 }
 0x28b   :  { %p1079_p9 = pnand %p1077_p8, %p1074_p7 }
 0x28d   :  { %1082 = shalt.err (!%p1079_p9)
}
 0x28e   :  { %667 = dma.vmem_to_hbm [thread:$0]  %s662_s16, 512, %s1240_s6, [#allocation6], %s1090_s7, %s1090_s7, %s1091_s8  }
 0x28f   :  { %1087 = dma.done.wait [#allocation6], 512  }
 0x290   :  { %1088 = vsyncadd [#allocation6], 4294966784 }
 0x291   :  { %671 = vsyncpa [#allocation5], 1 }
 0x292   :  { %672 = vsyncpa [#allocation8], 1 }
 0x293   :  { %673 = vsyncpa [#allocation6], 1 }

</bundles_post_ra>
